<compile_context>
chip_gen: v7x
topology: tpu7x:2x2x1
jax: 0.10.0
libtpu: 0.0.40
codegen_flags: <defaults>
</compile_context>

<pallas_src>
import math

import jax
import jax.numpy as jnp
from jax.experimental import pallas as pl
from jax.experimental.pallas import tpu as pltpu


# 48 MiB scoped VMEM: safe on v5e/v6e (128 MiB physical) and v7x (64 MiB physical);
# holds double-buffered ~4 MiB x/out tiles plus the resident pe tile with headroom.
_VMEM_LIMIT_BYTES = 48 * 1024 * 1024
_TILE_TARGET_BYTES = 4 * 1024 * 1024


def build_positional_encoding(d_model: int, max_len: int, dtype=jnp.float32) -> jnp.ndarray:
    """Sinusoidal positional-encoding buffer, shape (1, max_len, d_model). Mirrors __init__."""
    assert d_model % 2 == 0, f"d_model must be even, got {d_model}"
    position = jnp.arange(max_len, dtype=jnp.float32)[:, None]                  # (max_len, 1)
    div_term = jnp.exp(
        jnp.arange(0, d_model, 2, dtype=jnp.float32) * (-math.log(10000.0) / d_model)
    )                                                                            # (d_model//2,)
    angles = position * div_term                                                 # (max_len, d_model//2)
    pe = jnp.zeros((max_len, d_model), dtype=jnp.float32)
    pe = pe.at[:, 0::2].set(jnp.sin(angles))
    pe = pe.at[:, 1::2].set(jnp.cos(angles))
    return pe[None].astype(dtype)                                                # (1, max_len, d_model)


def _add_kernel(x_ref, pe_ref, o_ref):
    # 3D path:  x_ref/o_ref (TS, D) (batch squeezed), pe_ref (TS, D)
    # flat path: x_ref/o_ref (TB, T),                  pe_ref (1, T) -> broadcast over batch
    o_ref[...] = (x_ref[...] + pe_ref[...]).astype(o_ref.dtype)


def _pick_seq_tile(s: int, d: int, itemsize: int, target_bytes: int = _TILE_TARGET_BYTES) -> int:
    """Seq-tile rows: multiple of 8 near the byte target; full extent if S is small."""
    rows = max((target_bytes // max(d * itemsize, 1)) // 8 * 8, 8)
    return s if s <= rows else rows           # full-extent block is always legal; else ragged tail via cdiv


def _pick_flat_tiles(b: int, n: int, itemsize: int, target_bytes: int = _TILE_TARGET_BYTES):
    """(tb, t) for the flattened (B, S*D) path. tb multiple of 8 (or full B), t multiple of 128 (or full N)."""
    if b * 128 * itemsize > target_bytes:
        tb = max((target_bytes // (128 * itemsize)) // 8 * 8, 8)   # tile the batch axis too
    else:
        tb = b                                                     # full extent (always legal)
    lanes = max((target_bytes // max(tb * itemsize, 1)) // 128 * 128, 128)
    t = n if n <= lanes else lanes
    return tb, t


def _forward_3d(x: jnp.ndarray, pe: jnp.ndarray) -> jnp.ndarray:
    """Seq-tiled path (d % 128 == 0). pe tile stays VMEM-resident across the inner batch axis."""
    b, s, d = x.shape
    out_dtype = jnp.promote_types(x.dtype, pe.dtype)
    itemsize = max(jnp.dtype(x.dtype).itemsize, jnp.dtype(out_dtype).itemsize)
    ts = _pick_seq_tile(s, d, itemsize)
    grid = (pl.cdiv(s, ts), b)                 # seq tiles outer, batch inner

    x_spec = pl.BlockSpec((pl.Squeezed(), ts, d), lambda si, bi: (bi, si, 0))
    pe_spec = pl.BlockSpec((pl.Squeezed(), ts, d), lambda si, bi: (0, si, 0))   # ignores batch -> resident
    o_spec = pl.BlockSpec((pl.Squeezed(), ts, d), lambda si, bi: (bi, si, 0))

    return pl.pallas_call(
        _add_kernel,
        out_shape=jax.ShapeDtypeStruct((b, s, d), out_dtype),
        grid_spec=pltpu.PrefetchScalarGridSpec(
            num_scalar_prefetch=0,
            grid=grid,
            in_specs=[x_spec, pe_spec],
            out_specs=o_spec,
        ),
        compiler_params=pltpu.CompilerParams(
            dimension_semantics=("parallel", "parallel"),   # both axes shard across v7x's 2 TCs
            vmem_limit_bytes=_VMEM_LIMIT_BYTES,
        ),
    )(x, pe)                                   # full (1, max_len, d) pe; no wrapper slice/copy


def _forward_flat(x: jnp.ndarray, pe: jnp.ndarray) -> jnp.ndarray:
    """Lane-dense path for d % 128 != 0: flatten (S, D) -> S*D on the lane axis (unmasked vst)."""
    b, s, d = x.shape
    n = s * d
    out_dtype = jnp.promote_types(x.dtype, pe.dtype)
    itemsize = max(jnp.dtype(x.dtype).itemsize, jnp.dtype(out_dtype).itemsize)
    tb, t = _pick_flat_tiles(b, n, itemsize)

    x2 = x.reshape(b, n)                       # row-major, free
    # d < 128 so this slice+reshape is tiny (<= S*D elements) next to the B*S*D x/out streams.
    pe2 = pe[:, :s, :].reshape(1, n)

    out = pl.pallas_call(
        _add_kernel,
        out_shape=jax.ShapeDtypeStruct((b, n), out_dtype),
        grid_spec=pltpu.PrefetchScalarGridSpec(
            num_scalar_prefetch=0,
            grid=(pl.cdiv(n, t), pl.cdiv(b, tb)),   # lane tiles outer, batch inner -> pe tile resident
            in_specs=[
                pl.BlockSpec((tb, t), lambda ni, bi: (bi, ni)),
                pl.BlockSpec((1, t), lambda ni, bi: (0, ni)),
            ],
            out_specs=pl.BlockSpec((tb, t), lambda ni, bi: (bi, ni)),
        ),
        compiler_params=pltpu.CompilerParams(
            dimension_semantics=("parallel", "parallel"),
            vmem_limit_bytes=_VMEM_LIMIT_BYTES,
        ),
    )(x2, pe2)
    return out.reshape(b, s, d)


def positional_encoding_forward(x: jnp.ndarray, pe: jnp.ndarray) -> jnp.ndarray:
    """x: [B, S, D]; pe: [1, max_len, D] with max_len >= S. Returns x + pe[0, :S, :]."""
    b, s, d = x.shape
    assert pe.ndim == 3 and pe.shape[0] == 1 and pe.shape[2] == d, f"bad pe shape {pe.shape}"
    assert s <= pe.shape[1], f"seq_len {s} exceeds max_len {pe.shape[1]}"

    if d % 128 != 0:
        return _forward_flat(x, pe)            # always lane-dense for d not multiple of 128
    return _forward_3d(x, pe)


if __name__ == "__main__":
    key = jax.random.PRNGKey(0)
    k1, k2 = jax.random.split(key)

    # Case 1: module-like small shapes (d_model=32 < 128 -> lane-dense flattened path).
    batch, seq_len, d_model, max_len = 2, 8, 32, 16
    x1 = jax.random.normal(k1, (batch, seq_len, d_model), dtype=jnp.float32)
    pe1 = build_positional_encoding(d_model, max_len, dtype=jnp.float32)
    out1 = jax.block_until_ready(positional_encoding_forward(x1, pe1))
    ref1 = x1 + pe1[0, :seq_len, :]
    assert out1.shape == (batch, seq_len, d_model)
    assert jnp.allclose(out1, ref1, atol=1e-6), "mismatch vs reference (flat path)"

    # Case 2: lane-aligned d_model=128 -> seq-tiled 3D path with VMEM-resident pe tile,
    # seq_len < max_len exercises the in-kernel indexing of the full pe buffer.
    b2, s2, d2, ml2 = 2, 8, 128, 16
    x2 = jax.random.normal(k2, (b2, s2, d2), dtype=jnp.float32)
    pe2 = build_positional_encoding(d2, ml2, dtype=jnp.float32)
    out2 = jax.block_until_ready(positional_encoding_forward(x2, pe2))
    ref2 = x2 + pe2[0, :s2, :]
    assert out2.shape == (b2, s2, d2)
    assert jnp.allclose(out2, ref2, atol=1e-6), "mismatch vs reference (3D path)"

    print("KERNEL_OK")
</pallas_src>

<mosaic_0001>
module attributes {stable_mosaic.version = 11 : i64} {
  func.func @_add_kernel(%arg0: i32, %arg1: i32, %arg2: memref<2x256xf32, #tpu.memory_space<vmem>>, %arg3: memref<1x256xf32, #tpu.memory_space<vmem>>, %arg4: memref<2x256xf32, #tpu.memory_space<vmem>>) attributes {dimension_semantics = [#tpu.dimension_semantics<parallel>, #tpu.dimension_semantics<parallel>], iteration_bounds = array<i64: 1, 1>, scalar_prefetch = 0 : i64, scratch_operands = 0 : i64, tpu.core_type = #tpu.core_type<tc>, window_params = [{transform_indices = @transform_0, window_bounds = array<i64: 2, 256>}, {transform_indices = @transform_1, window_bounds = array<i64: 1, 256>}, {transform_indices = @transform_2, window_bounds = array<i64: 2, 256>}]} {
    %c0 = arith.constant 0 : index
    %c0_0 = arith.constant 0 : index
    %0 = vector.load %arg2[%c0, %c0_0] : memref<2x256xf32, #tpu.memory_space<vmem>>, vector<2x256xf32>
    %c0_1 = arith.constant 0 : index
    %c0_2 = arith.constant 0 : index
    %1 = vector.load %arg3[%c0_1, %c0_2] : memref<1x256xf32, #tpu.memory_space<vmem>>, vector<1x256xf32>
    %2 = vector.broadcast %1 : vector<1x256xf32> to vector<2x256xf32>
    %3 = arith.addf %0, %2 : vector<2x256xf32>
    %c0_3 = arith.constant 0 : index
    %c0_4 = arith.constant 0 : index
    %4 = vector.load %arg4[%c0_3, %c0_4] : memref<2x256xf32, #tpu.memory_space<vmem>>, vector<2x256xf32>
    tpu.vector_store %arg4[%c0_3, %c0_4], %3 {strides = array<i32>} : memref<2x256xf32, #tpu.memory_space<vmem>>, vector<2x256xf32>,
    return
  }
  func.func @transform_0(%arg0: i32, %arg1: i32) -> (i32, i32) {
    %c0_i32 = arith.constant 0 : i32
    return %arg1, %arg0 : i32, i32
  }
  func.func @transform_1(%arg0: i32, %arg1: i32) -> (i32, i32) {
    %c0_i32 = arith.constant 0 : i32
    %c0_i32_0 = arith.constant 0 : i32
    return %c0_i32, %arg0 : i32, i32
  }
  func.func @transform_2(%arg0: i32, %arg1: i32) -> (i32, i32) {
    %c0_i32 = arith.constant 0 : i32
    return %arg1, %arg0 : i32, i32
  }
}

</mosaic_0001>

<bundles_post_ra>
// kernel: tpu_custom_call.1
= control target key start
LH: loop header
LB: loop body
LE: loop exit
PB: predicated region body
PF: predicated region fallthrough
CT: control target
= control target key end

     0   :  { %7 = vsyncpa [#allocation3], 0  ;;  %s157_s0 = inlined_call_operand.hbm [shape: f32[2,256], index: 0, kind: input, shape index: {}]   ;;  %s158_s1 = inlined_call_operand.vmem [shape: f32[1,256], index: 1, kind: input, shape index: {}]   ;;  %s159_s2 = inlined_call_operand.hbm [shape: f32[2,256], index: 2, kind: output, shape index: {}]  }
   0x1   :  { %8 = vsyncpa [#allocation4], 0  ;;  %s112_s9 = smov [#allocation2]   ;;  %s64_s13 = scalar_lea.hbm %s157_s0, 64 }
   0x2   :  { %s15_s10 = sshll.u32 %s112_s9, 4  ;;  %p65_p0 = scmp.ne.s32.totalorder %s157_s0, %s64_s13  ;;  %s16_s10 = int_to_ptr.vmem [resolvable:$true] %s15_s10 }
   0x3   :  { %p68_p1 = scmp.lt.u32.totalorder %s64_s13, %s157_s0 }
   0x5   :  { %p70_p2 = pnand %p68_p1, %p65_p0 }
   0x7   :  { %73 = shalt.err (!%p70_p2)
}
   0x8   :  { %s74_s18 = scalar_lea.vmem %s16_s10, 64  ;;  %p79_p4 = scmp.lt.s32.totalorder %s16_s10, %s16_s10 }
   0x9   :  { %p75_p3 = scmp.ne.s32.totalorder %s16_s10, %s74_s18  ;;  %p80_p5 = scmp.lt.s32.totalorder %s74_s18, %s74_s18 }
   0xb   :  { %p81_p6 = por %p80_p5, %p79_p4 }
   0xd   :  { %p82_p7 = pnand %p81_p6, %p75_p3 }
   0xf   :  { %85 = shalt.err (!%p82_p7)
}
  0x10   :  { %18 = dma.hbm_to_vmem [thread:$0]  %s157_s0, 64, %s16_s10, [#allocation3]  }
  0x11   :  { %108 = dma.done.wait [#allocation3], 64  }
  0x12   :  { %109 = vsyncadd [#allocation3], 4294967232  ;;  %v27_v0 = vlaneseq  ;;  %v113_v1 = vmov 1983009808   ;;  %v25_v7 = vld [vmem:[%s158_s1] sm:$0x3] }
  0x13   :  { %v37_v2 = vunpack.c.l.s4 %v113_v1  ;;  %v24_v12 = vld [vmem:[#allocation2] sm:$0xf]  ;;  %s114_s23 = smov [#allocation5]  }
  0x14   :  { %v28_v3 = vshrl.u32 %v27_v0, 7  ;;  %s52_s0 = sshll.u32 %s114_s23, 4  ;;  %s53_s0 = int_to_ptr.vmem [resolvable:$true] %s52_s0 }
  0x15   :  { %v38_v6 = vunpack.c.0.s8 %v37_v2  ;;  %s86_s24 = scalar_lea.vmem %s53_s0, 64  ;;  %p91_p9 = scmp.lt.s32.totalorder %s53_s0, %s53_s0 }
  0x16   :  { %v29_v4 = vsub.s32 0, %v28_v3  ;;  %v33_v5 = vsub.s32 1, %v28_v3  ;;  %p87_p8 = scmp.ne.s32.totalorder %s53_s0, %s86_s24  ;;  %p92_p10 = scmp.lt.s32.totalorder %s86_s24, %s86_s24 }
  0x17   :  { %v41_v10 = vsub.s32 %v38_v6, %v28_v3 }
  0x18   :  { %v30_v8 = vrot.slane %v25_v7, %v29_v4  ;;  %v34_v9 = vrot.slane %v25_v7, %v33_v5  ;;  %p93_p11 = por %p92_p10, %p91_p9 }
  0x1a   :  { %v35_v11 = vcombine.low %v30_v8, %v34_v9  ;;  %p94_p12 = pnand %p93_p11, %p87_p8 }
  0x1c   :  { %v42_v13 = vrot.slane %v35_v11, %v41_v10 }
  0x1e   :  { %v44_v14 = vadd.f32 %v42_v13, %v24_v12 }
  0x20   :  { %45 = vst [vmem:[#allocation5] sm:$0xf] %v44_v14 }
  0x21   :  { %97 = shalt.err (!%p94_p12)
}
  0x22   :  { %s98_s26 = scalar_lea.hbm %s159_s2, 64 }
  0x23   :  { %p99_p13 = scmp.ne.s32.totalorder %s159_s2, %s98_s26  ;;  %p102_p0 = scmp.lt.u32.totalorder %s98_s26, %s159_s2 }
  0x25   :  { %p104_p1 = pnand %p102_p0, %p99_p13 }
  0x27   :  { %107 = shalt.err (!%p104_p1)
}
  0x28   :  { %55 = dma.vmem_to_hbm [thread:$0]  %s53_s0, 64, %s159_s2, [#allocation4]  }
  0x29   :  { %110 = dma.done.wait [#allocation4], 64  }
  0x2a   :  { %111 = vsyncadd [#allocation4], 4294967232 }
  0x2b   :  { %59 = vsyncpa [#allocation3], 1 }
  0x2c   :  { %60 = vsyncpa [#allocation4], 1 }

</bundles_post_ra>
